<compile_context>
chip_gen: v7x
topology: tpu7x:2x2x1
jax: 0.10.0
libtpu: 0.0.40
codegen_flags: <defaults>
</compile_context>

<pallas_src>
from functools import partial

import jax
import jax.numpy as jnp
from jax.experimental import pallas as pl
from jax.experimental.pallas import tpu as pltpu


# ----------------------------------------------------------------------------
# Kernel
# ----------------------------------------------------------------------------
def _barlow_twins_kernel(z1_ref, z2_ref, loss_ref, *, lambda_coeff):
    n, d = z1_ref.shape
    inv_n = 1.0 / n
    inv_nm1 = 1.0 / (n - 1)  # torch.std default: unbiased (Bessel correction)

    z1 = z1_ref[...].astype(jnp.float32)
    z2 = z2_ref[...].astype(jnp.float32)

    # Per-feature mean / unbiased std over the batch axis (sublane reductions).
    mu1 = jnp.sum(z1, axis=0, keepdims=True) * inv_n            # (1, D)
    mu2 = jnp.sum(z2, axis=0, keepdims=True) * inv_n            # (1, D)
    z1c = z1 - mu1
    z2c = z2 - mu2
    var1 = jnp.sum(z1c * z1c, axis=0, keepdims=True) * inv_nm1  # (1, D)
    var2 = jnp.sum(z2c * z2c, axis=0, keepdims=True) * inv_nm1  # (1, D)
    z1n = z1c * jax.lax.rsqrt(var1)                             # EUP rsqrt
    z2n = z2c * jax.lax.rsqrt(var2)

    # Cross-correlation C = z1n.T @ z2n / N  -> (D, D) on the MXU.
    # Contract over the batch (dim 0 of both operands).
    cc = jax.lax.dot_general(
        z1n, z2n, (((0,), (0,)), ((), ())),
        preferred_element_type=jnp.float32) * inv_n

    # Diagonal / off-diagonal split via an iota mask (no gathers).
    row = jax.lax.broadcasted_iota(jnp.int32, (d, d), 0)
    col = jax.lax.broadcasted_iota(jnp.int32, (d, d), 1)
    is_diag = row == col

    diag_diff = jnp.where(is_diag, cc - 1.0, 0.0)
    off = jnp.where(is_diag, 0.0, cc)

    def _full_sum(x):
        # (D, D) -> (1, 1): lane reduction then sublane reduction.
        return jnp.sum(jnp.sum(x, axis=1, keepdims=True), axis=0, keepdims=True)

    on_diag = _full_sum(diag_diff * diag_diff)
    off_diag = _full_sum(off * off)

    loss_ref[...] = on_diag + lambda_coeff * off_diag


# ----------------------------------------------------------------------------
# Wrapper
# ----------------------------------------------------------------------------
def barlow_twins_loss(z1, z2, lambda_coeff=0.005):
    """z1, z2: (N, D). Returns scalar f32 loss (matches BarlowTwinsLoss.forward)."""
    assert z1.shape == z2.shape and z1.ndim == 2, (z1.shape, z2.shape)
    n, d = z1.shape
    assert n >= 2, "need at least 2 samples for an unbiased std"

    cost = pl.CostEstimate(
        flops=2 * n * d * d + 10 * n * d + 6 * d * d,
        transcendentals=2 * d,
        bytes_accessed=2 * n * d * 4 + 4,
    )

    out = pl.pallas_call(
        partial(_barlow_twins_kernel, lambda_coeff=float(lambda_coeff)),
        out_shape=jax.ShapeDtypeStruct((1, 1), jnp.float32),
        in_specs=[
            pl.BlockSpec(memory_space=pltpu.MemorySpace.VMEM),
            pl.BlockSpec(memory_space=pltpu.MemorySpace.VMEM),
        ],
        out_specs=pl.BlockSpec(memory_space=pltpu.MemorySpace.VMEM),
        cost_estimate=cost,
    )(z1, z2)
    return out[0, 0]


# ----------------------------------------------------------------------------
# Self-test
# ----------------------------------------------------------------------------
if __name__ == "__main__":
    key = jax.random.PRNGKey(0)
    k1, k2 = jax.random.split(key)

    batch, z_dim = 16, 128           # z_dim matches the module default (lane-dense)
    lambda_coeff = 0.005

    z1 = jax.random.normal(k1, (batch, z_dim), jnp.float32)
    z2 = z1 + 0.1 * jax.random.normal(k2, (batch, z_dim), jnp.float32)

    loss = jax.block_until_ready(barlow_twins_loss(z1, z2, lambda_coeff))

    # Pure-JAX reference with identical semantics to the PyTorch module.
    def _ref(a, b):
        an = (a - a.mean(0)) / a.std(0, ddof=1)
        bn = (b - b.mean(0)) / b.std(0, ddof=1)
        c = (an.T @ bn) / a.shape[0]
        diag = jnp.diag(c)
        on = jnp.sum((diag - 1.0) ** 2)
        off = jnp.sum(c * c) - jnp.sum(diag * diag)
        return on + lambda_coeff * off

    ref = _ref(z1, z2)

    assert loss.shape == (), loss.shape
    assert jnp.isfinite(loss)
    assert jnp.abs(loss - ref) <= 1e-3 + 1e-2 * jnp.abs(ref), (float(loss), float(ref))
    print("KERNEL_OK")
</pallas_src>

<mosaic_0001>
module attributes {stable_mosaic.version = 11 : i64} {
  func.func @_barlow_twins_kernel(%arg0: memref<16x128xf32, #tpu.memory_space<vmem>>, %arg1: memref<16x128xf32, #tpu.memory_space<vmem>>, %arg2: memref<1x1xf32, #tpu.memory_space<vmem>>) attributes {dimension_semantics = [], scalar_prefetch = 0 : i64, scratch_operands = 0 : i64, tpu.core_type = #tpu.core_type<tc>} {
    %c0 = arith.constant 0 : index
    %c0_0 = arith.constant 0 : index
    %0 = vector.load %arg0[%c0, %c0_0] : memref<16x128xf32, #tpu.memory_space<vmem>>, vector<16x128xf32>
    %c0_1 = arith.constant 0 : index
    %c0_2 = arith.constant 0 : index
    %1 = vector.load %arg1[%c0_1, %c0_2] : memref<16x128xf32, #tpu.memory_space<vmem>>, vector<16x128xf32>
    %cst = arith.constant dense<0.000000e+00> : vector<128xf32>
    %2 = vector.multi_reduction <add>, %0, %cst [0] : vector<16x128xf32> to vector<128xf32>
    %3 = vector.shape_cast %2 : vector<128xf32> to vector<1x128xf32>
    %cst_3 = arith.constant 6.250000e-02 : f32
    %4 = vector.broadcast %cst_3 : f32 to vector<1x128xf32>
    %5 = arith.mulf %3, %4 : vector<1x128xf32>
    %cst_4 = arith.constant dense<0.000000e+00> : vector<128xf32>
    %6 = vector.multi_reduction <add>, %1, %cst_4 [0] : vector<16x128xf32> to vector<128xf32>
    %7 = vector.shape_cast %6 : vector<128xf32> to vector<1x128xf32>
    %cst_5 = arith.constant 6.250000e-02 : f32
    %8 = vector.broadcast %cst_5 : f32 to vector<1x128xf32>
    %9 = arith.mulf %7, %8 : vector<1x128xf32>
    %10 = vector.broadcast %5 : vector<1x128xf32> to vector<16x128xf32>
    %11 = arith.subf %0, %10 : vector<16x128xf32>
    %12 = vector.broadcast %9 : vector<1x128xf32> to vector<16x128xf32>
    %13 = arith.subf %1, %12 : vector<16x128xf32>
    %14 = arith.mulf %11, %11 : vector<16x128xf32>
    %cst_6 = arith.constant dense<0.000000e+00> : vector<128xf32>
    %15 = vector.multi_reduction <add>, %14, %cst_6 [0] : vector<16x128xf32> to vector<128xf32>
    %16 = vector.shape_cast %15 : vector<128xf32> to vector<1x128xf32>
    %cst_7 = arith.constant 0.0666666701 : f32
    %17 = vector.broadcast %cst_7 : f32 to vector<1x128xf32>
    %18 = arith.mulf %16, %17 : vector<1x128xf32>
    %19 = arith.mulf %13, %13 : vector<16x128xf32>
    %cst_8 = arith.constant dense<0.000000e+00> : vector<128xf32>
    %20 = vector.multi_reduction <add>, %19, %cst_8 [0] : vector<16x128xf32> to vector<128xf32>
    %21 = vector.shape_cast %20 : vector<128xf32> to vector<1x128xf32>
    %cst_9 = arith.constant 0.0666666701 : f32
    %22 = vector.broadcast %cst_9 : f32 to vector<1x128xf32>
    %23 = arith.mulf %21, %22 : vector<1x128xf32>
    %24 = math.rsqrt %18 : vector<1x128xf32>
    %25 = vector.broadcast %24 : vector<1x128xf32> to vector<16x128xf32>
    %26 = arith.mulf %11, %25 : vector<16x128xf32>
    %27 = math.rsqrt %23 : vector<1x128xf32>
    %28 = vector.broadcast %27 : vector<1x128xf32> to vector<16x128xf32>
    %29 = arith.mulf %13, %28 : vector<16x128xf32>
    %cst_10 = arith.constant dense<0.000000e+00> : vector<128x128xf32>
    %30 = tpu.matmul %26, %29, %cst_10 {dimension_numbers = #tpu.dot_dimension_numbers<[0], [0], [1], [1], [0, 1, 1, 1], [], []>} : vector<16x128xf32>, vector<16x128xf32>, vector<128x128xf32> -> vector<128x128xf32>
    %cst_11 = arith.constant 6.250000e-02 : f32
    %31 = vector.broadcast %cst_11 : f32 to vector<128x128xf32>
    %32 = arith.mulf %30, %31 : vector<128x128xf32>
    %33 = tpu.iota {dimensions = array<i32: 0>} : vector<128x128xi32>
    %34 = tpu.iota {dimensions = array<i32: 1>} : vector<128x128xi32>
    %35 = arith.cmpi eq, %33, %34 : vector<128x128xi32>
    %cst_12 = arith.constant 1.000000e+00 : f32
    %36 = vector.broadcast %cst_12 : f32 to vector<128x128xf32>
    %37 = arith.subf %32, %36 : vector<128x128xf32>
    %cst_13 = arith.constant 0.000000e+00 : f32
    %38 = vector.broadcast %cst_13 : f32 to vector<128x128xf32>
    %39 = arith.select %35, %37, %38 : vector<128x128xi1>, vector<128x128xf32>
    %cst_14 = arith.constant 0.000000e+00 : f32
    %40 = vector.broadcast %cst_14 : f32 to vector<128x128xf32>
    %41 = arith.select %35, %40, %32 : vector<128x128xi1>, vector<128x128xf32>
    %42 = arith.mulf %39, %39 : vector<128x128xf32>
    %cst_15 = arith.constant dense<0.000000e+00> : vector<128xf32>
    %43 = vector.multi_reduction <add>, %42, %cst_15 [1] : vector<128x128xf32> to vector<128xf32>
    %44 = vector.shape_cast %43 : vector<128xf32> to vector<128x1xf32>
    %cst_16 = arith.constant dense<0.000000e+00> : vector<1xf32>
    %45 = vector.multi_reduction <add>, %44, %cst_16 [0] : vector<128x1xf32> to vector<1xf32>
    %46 = vector.shape_cast %45 : vector<1xf32> to vector<1x1xf32>
    %47 = arith.mulf %41, %41 : vector<128x128xf32>
    %cst_17 = arith.constant dense<0.000000e+00> : vector<128xf32>
    %48 = vector.multi_reduction <add>, %47, %cst_17 [1] : vector<128x128xf32> to vector<128xf32>
    %49 = vector.shape_cast %48 : vector<128xf32> to vector<128x1xf32>
    %cst_18 = arith.constant dense<0.000000e+00> : vector<1xf32>
    %50 = vector.multi_reduction <add>, %49, %cst_18 [0] : vector<128x1xf32> to vector<1xf32>
    %51 = vector.shape_cast %50 : vector<1xf32> to vector<1x1xf32>
    %cst_19 = arith.constant 5.000000e-03 : f32
    %52 = vector.broadcast %cst_19 : f32 to vector<1x1xf32>
    %53 = arith.mulf %52, %51 : vector<1x1xf32>
    %54 = arith.addf %46, %53 : vector<1x1xf32>
    %c0_20 = arith.constant 0 : index
    %c0_21 = arith.constant 0 : index
    %55 = vector.load %arg2[%c0_20, %c0_21] : memref<1x1xf32, #tpu.memory_space<vmem>>, vector<1x1xf32>
    tpu.vector_store %arg2[%c0_20, %c0_21], %54 {strides = array<i32>} : memref<1x1xf32, #tpu.memory_space<vmem>>, vector<1x1xf32>,
    return
  }
}

</mosaic_0001>

<bundles_post_ra>
// kernel: tpu_custom_call.1
= control target key start
LH: loop header
LB: loop body
LE: loop exit
PB: predicated region body
PF: predicated region fallthrough
CT: control target
= control target key end

     0   :  { %7 = vsyncpa [#allocation3], 0  ;;  %s914_s0 = inlined_call_operand.hbm [shape: f32[16,128], index: 0, kind: input, shape index: {}]   ;;  %s915_s1 = inlined_call_operand.hbm [shape: f32[16,128], index: 1, kind: input, shape index: {}]   ;;  %s916_s2 = inlined_call_operand.hbm [shape: f32[1,1], index: 2, kind: output, shape index: {}]  }
   0x1   :  { %8 = vsyncpa [#allocation6], 0 }
   0x2   :  { %9 = vsyncpa [#allocation4], 0  ;;  %s739_s9 = smov [#allocation2]   ;;  %s667_s13 = scalar_lea.hbm %s914_s0, 256 }
   0x3   :  { %s15_s10 = sshll.u32 %s739_s9, 4  ;;  %p668_p0 = scmp.ne.s32.totalorder %s914_s0, %s667_s13  ;;  %s16_s10 = int_to_ptr.vmem [resolvable:$true] %s15_s10 }
   0x4   :  { %p671_p1 = scmp.lt.u32.totalorder %s667_s13, %s914_s0 }
   0x6   :  { %p673_p2 = pnand %p671_p1, %p668_p0 }
   0x8   :  { %676 = shalt.err (!%p673_p2)
}
   0x9   :  { %s677_s18 = scalar_lea.vmem %s16_s10, 256  ;;  %p682_p4 = scmp.lt.s32.totalorder %s16_s10, %s16_s10 }
   0xa   :  { %p678_p3 = scmp.ne.s32.totalorder %s16_s10, %s677_s18  ;;  %p683_p5 = scmp.lt.s32.totalorder %s677_s18, %s677_s18 }
   0xc   :  { %p684_p6 = por %p683_p5, %p682_p4 }
   0xe   :  { %p685_p7 = pnand %p684_p6, %p678_p3 }
  0x10   :  { %688 = shalt.err (!%p685_p7)
}
  0x11   :  { %s740_s19 = smov 128   ;;  %s741_s20 = smov 8  }
  0x12   :  { %21 = dma.hbm_to_vmem [thread:$0]  %s914_s0, 256, %s16_s10, [#allocation3], %s740_s19, %s740_s19, %s741_s20  }
  0x13   :  { %s742_s23 = smov [#allocation5]   ;;  %s689_s27 = scalar_lea.hbm %s915_s1, 256 }
  0x14   :  { %s27_s24 = sshll.u32 %s742_s23, 4  ;;  %p690_p8 = scmp.ne.s32.totalorder %s915_s1, %s689_s27  ;;  %s28_s24 = int_to_ptr.vmem [resolvable:$true] %s27_s24 }
  0x15   :  { %p693_p9 = scmp.lt.u32.totalorder %s689_s27, %s915_s1 }
  0x17   :  { %p695_p10 = pnand %p693_p9, %p690_p8 }
  0x19   :  { %698 = shalt.err (!%p695_p10)
}
  0x1a   :  { %s699_s4 = scalar_lea.vmem %s28_s24, 256  ;;  %p704_p12 = scmp.lt.s32.totalorder %s28_s24, %s28_s24 }
  0x1b   :  { %p700_p11 = scmp.ne.s32.totalorder %s28_s24, %s699_s4  ;;  %p705_p13 = scmp.lt.s32.totalorder %s699_s4, %s699_s4 }
  0x1d   :  { %p706_p0 = por %p705_p13, %p704_p12 }
  0x1f   :  { %p707_p1 = pnand %p706_p0, %p700_p11 }
  0x21   :  { %710 = shalt.err (!%p707_p1)
}
  0x22   :  { %33 = dma.hbm_to_vmem [thread:$0]  %s915_s1, 256, %s28_s24, [#allocation6], %s740_s19, %s740_s19, %s741_s20  }
  0x23   :  { %733 = dma.done.wait [#allocation3], 256  }
  0x24   :  { %734 = vsyncadd [#allocation3], 4294967040 }
  0x25   :  { %735 = dma.done.wait [#allocation6], 256  }
  0x26   :  { %736 = vsyncadd [#allocation6], 4294967040  ;;  %v40_v0 = vld [vmem:[#allocation2] sm:$0xff]  ;;  %v41_v1 = vld [vmem:[#allocation2 + $0x8] sm:$0xff]  ;;  %vm122_vm0 = vcmask 130048   ;;  %s743_s1 = smov [#allocation7]  }
  0x27   :  { %v42_v2 = vld [vmem:[#allocation5] sm:$0xff]  ;;  %v44_v3 = vadd.f32 %v41_v1, %v40_v0  ;;  %v43_v4 = vld [vmem:[#allocation5 + $0x8] sm:$0xff]  ;;  %s563_s6 = sshll.u32 %s743_s1, 4  ;;  %s564_s6 = int_to_ptr.vmem [resolvable:$true] %s563_s6 }
  0x28   :  { %v52_v5 = vadd.f32 %v43_v4, %v42_v2  ;;  %s711_s7 = scalar_lea.vmem %s564_s6, 16  ;;  %s715_s8 = scalar_lea.vmem %s564_s6, 32 }
  0x29   :  { %v45_v6 = vrot.slane %v44_v3, 4  ;;  %p712_p2 = scmp.ne.s32.totalorder %s564_s6, %s711_s7  ;;  %p716_p3 = scmp.lt.s32.totalorder %s564_s6, %s564_s6 }
  0x2a   :  { %v53_v7 = vrot.slane %v52_v5, 4  ;;  %p717_p4 = scmp.lt.s32.totalorder %s715_s8, %s711_s7 }
  0x2b   :  { %v46_v8 = vadd.f32 %v45_v6, %v44_v3  ;;  %v332_v3 = vlaneseq }
  0x2c   :  { %v54_v9 = vadd.f32 %v53_v7, %v52_v5  ;;  %p718_p5 = por %p717_p4, %p716_p3 }
  0x2d   :  { %v47_v10 = vrot.slane %v46_v8, 2  ;;  %v802_v6 = vand.u32 127, %v332_v3 }
  0x2e   :  { %v55_v11 = vrot.slane %v54_v9, 2  ;;  %p719_p6 = pnand %p718_p5, %p712_p2 }
  0x2f   :  { %v48_v12 = vadd.f32 %v47_v10, %v46_v8 }
  0x30   :  { %v56_v13 = vadd.f32 %v55_v11, %v54_v9 }
  0x31   :  { %v49_v14 = vrot.slane %v48_v12, 1 }
  0x32   :  { %v57_v15 = vrot.slane %v56_v13, 1 }
  0x33   :  { %v50_v16 = vadd.f32 %v49_v14, %v48_v12 }
  0x34   :  { %v58_v17 = vadd.f32 %v57_v15, %v56_v13 }
  0x35   :  { %v51_v18 = vmul.f32 0.0625, %v50_v16 }
  0x36   :  { %v59_v19 = vmul.f32 0.0625, %v58_v17 }
  0x37   :  { %v60_v20 = vsub.f32 %v40_v0, %v51_v18  ;;  %v61_v21 = vsub.f32 %v41_v1, %v51_v18 }
  0x38   :  { %v62_v22 = vsub.f32 %v42_v2, %v59_v19  ;;  %v63_v23 = vsub.f32 %v43_v4, %v59_v19  ;;  %v799_v4 = vshrl.u32 %v332_v3, 7 }
  0x39   :  { %v64_v24 = vmul.f32 %v60_v20, %v60_v20  ;;  %v65_v25 = vmul.f32 %v61_v21, %v61_v21 }
  0x3a   :  { %v74_v26 = vmul.f32 %v62_v22, %v62_v22  ;;  %v75_v27 = vmul.f32 %v63_v23, %v63_v23  ;;  %v334_v5 = vadd.s32 8, %v799_v4  ;;  %vm351_vm2 = vcmp.eq.s32.totalorder %v799_v4, %v802_v6 }
  0x3b   :  { %v66_v28 = vadd.f32 %v65_v25, %v64_v24  ;;  %v336_v14 = vadd.s32 24, %v799_v4  ;;  %v335_v24 = vadd.s32 16, %v799_v4 }
  0x3c   :  { %v76_v29 = vadd.f32 %v75_v27, %v74_v26  ;;  %vm352_vm1 = vcmp.eq.s32.totalorder %v334_v5, %v802_v6 }
  0x3d   :  { %v67_v30 = vrot.slane %v66_v28, 4  ;;  %vm354_vm3 = vcmp.eq.s32.totalorder %v336_v14, %v802_v6  ;;  %vm353_vm4 = vcmp.eq.s32.totalorder %v335_v24, %v802_v6 }
  0x3e   :  { %v77_v31 = vrot.slane %v76_v29, 4 }
  0x3f   :  { %v68_v32 = vadd.f32 %v67_v30, %v66_v28 }
  0x40   :  { %v78_v33 = vadd.f32 %v77_v31, %v76_v29 }
  0x41   :  { %v69_v34 = vrot.slane %v68_v32, 2 }
  0x42   :  { %v79_v35 = vrot.slane %v78_v33, 2 }
  0x43   :  { %v70_v36 = vadd.f32 %v69_v34, %v68_v32  ;;  %v338_v34 = vadd.s32 40, %v799_v4 }
  0x44   :  { %v80_v37 = vadd.f32 %v79_v35, %v78_v33 }
  0x45   :  { %v71_v38 = vrot.slane %v70_v36, 1  ;;  %vm356_vm5 = vcmp.eq.s32.totalorder %v338_v34, %v802_v6  ;;  %v344_v34 = vadd.s32 88, %v799_v4 }
  0x46   :  { %v81_v39 = vrot.slane %v80_v37, 1 }
  0x47   :  { %v72_v40 = vadd.f32 %v71_v38, %v70_v36  ;;  %vm362_vm13 = vcmp.eq.s32.totalorder %v344_v34, %v802_v6 }
  0x48   :  { %v82_v41 = vadd.f32 %v81_v39, %v80_v37 }
  0x49   :  { %v73_v42 = vmul.f32 0.06666667, %v72_v40 }
  0x4a   :  { %v83_v43 = vmul.f32 0.06666667, %v82_v41 }
  0x4b   :  { %663 = vrsqrt.f32 %v73_v42  ;;  %v337_v42 = vadd.s32 32, %v799_v4 }
  0x4c   :  { %665 = vrsqrt.f32 %v83_v43 }
  0x4d   :  { %vm355_vm6 = vcmp.eq.s32.totalorder %v337_v42, %v802_v6 }
  0x55   :  { %v664_v44 = vpop.eup %663 }
  0x56   :  { %v666_v45 = vpop.eup %665  ;;  %v85_v46 = vmul.f32 %v664_v44, %v60_v20  ;;  %v86_v49 = vmul.f32 %v664_v44, %v61_v21 }
  0x57   :  { %v88_v47 = vmul.f32 %v666_v45, %v62_v22  ;;  %v89_v48 = vmul.f32 %v666_v45, %v63_v23 }
  0x58   :  { %90 = vxpose.xlu0.b32.start [1/2] (short) %v85_v46, 128 }
  0x59   :  { %v651_v50 = vpack.c.bf16 %v89_v48, %v88_v47 }
  0x5b   :  { %652 = vmatprep.subr.bf16.mxu0 %v651_v50  ;;  %655 = vmatprep.subr.bf16.mxu1 %v651_v50 }
  0x5c   :  { %91 = vxpose.xlu0.b32.end [2/2] (short) %v86_v49, 128  ;;  %654 = vmatpush3.bf16.msra.mxu0 %v651_v50 }
  0x5d   :  { %656 = vmatpush3.bf16.msra.mxu1 %v651_v50 }
  0xd8   :  { %v106_v51 = vpop.trf.xlu0 }
  0xd9   :  { %627 = vmatprep.mubr.msk.f32.mxu0 %vm122_vm0, %v106_v51 }
  0xdc   :  { %v107_v52 = vpop.trf.xlu0 }
  0xdd   :  { %628 = vmatmul.mubr.msk.f32.vlgmr.msra.gmra.mrb[0].mxu0 %vm122_vm0, %v107_v52  ;;  %v340_v52 = vadd.s32 56, %v799_v4 }
  0xdf   :  { %vm358_vm7 = vcmp.eq.s32.totalorder %v340_v52, %v802_v6 }
  0xe0   :  { %v108_v53 = vpop.trf.xlu0 }
  0xe1   :  { %630 = vmatprep.mubr.msk.f32.mxu0 %vm122_vm0, %v108_v53 }
  0xe4   :  { %v109_v54 = vpop.trf.xlu0 }
  0xe5   :  { %631 = vmatmul.mubr.msk.f32.gmra.mrb[2].mxu0 %vm122_vm0, %v109_v54 }
  0xe8   :  { %v110_v55 = vpop.trf.xlu0 }
  0xe9   :  { %633 = vmatprep.mubr.msk.f32.mxu0 %vm122_vm0, %v110_v55 }
  0xec   :  { %v111_v56 = vpop.trf.xlu0 }
  0xed   :  { %634 = vmatmul.mubr.msk.f32.gmra.mrb[4].mxu0 %vm122_vm0, %v111_v56 }
  0xf0   :  { %v112_v57 = vpop.trf.xlu0 }
  0xf1   :  { %636 = vmatprep.mubr.msk.f32.mxu0 %vm122_vm0, %v112_v57 }
  0xf4   :  { %v113_v58 = vpop.trf.xlu0 }
  0xf5   :  { %637 = vmatmul.mubr.msk.f32.gmra.mrb[6].mxu0 %vm122_vm0, %v113_v58 }
  0xf8   :  { %v114_v59 = vpop.trf.xlu0 }
  0xf9   :  { %639 = vmatprep.mubr.msk.f32.mxu1 %vm122_vm0, %v114_v59 }
  0xfc   :  { %v115_v60 = vpop.trf.xlu0 }
  0xfd   :  { %640 = vmatmul.mubr.msk.f32.vlgmr.msra.gmra.mrb[0].mxu1 %vm122_vm0, %v115_v60  ;;  %v339_v60 = vadd.s32 48, %v799_v4 }
  0xff   :  { %vm357_vm8 = vcmp.eq.s32.totalorder %v339_v60, %v802_v6 }
 0x100   :  { %v116_v61 = vpop.trf.xlu0 }
 0x101   :  { %642 = vmatprep.mubr.msk.f32.mxu1 %vm122_vm0, %v116_v61 }
 0x104   :  { %v117_v62 = vpop.trf.xlu0 }
 0x105   :  { %643 = vmatmul.mubr.msk.f32.gmra.mrb[2].mxu1 %vm122_vm0, %v117_v62 }
 0x108   :  { %v118_v63 = vpop.trf.xlu0 }
 0x109   :  { %645 = vmatprep.mubr.msk.f32.mxu1 %vm122_vm0, %v118_v63 }
 0x10c   :  { %v119_v0 = vpop.trf.xlu0 }
 0x10d   :  { %646 = vmatmul.mubr.msk.f32.gmra.mrb[4].mxu1 %vm122_vm0, %v119_v0 }
 0x110   :  { %v120_v1 = vpop.trf.xlu0 }
 0x111   :  { %648 = vmatprep.mubr.msk.f32.mxu1 %vm122_vm0, %v120_v1 }
 0x114   :  { %v121_v2 = vpop.trf.xlu0 }
 0x115   :  { %649 = vmatmul.mubr.msk.f32.gmra.mrb[6].mxu1 %vm122_vm0, %v121_v2 }
 0x1b0   :  { %v629_v7 = vpop.f32.mrb[0].mxu0 }
 0x1b1   :  { %v317_v8 = vmul.f32 0.0625, %v629_v7  ;;  %v237_v9 = vpop.f32.mrb[1].mxu0 }
 0x1b2   :  { %v316_v10 = vmul.f32 0.0625, %v237_v9 }
 0x1b3   :  { %v400_v11 = vsel %vm352_vm1, 0.0, %v317_v8  ;;  %v590_v15 = vadd.f32 -1.0, %v317_v8  ;;  %v342_v8 = vadd.s32 72, %v799_v4 }
 0x1b4   :  { %v589_v12 = vadd.f32 -1.0, %v316_v10  ;;  %v485_v13 = vmul.f32 %v400_v11, %v400_v11  ;;  %v399_v16 = vsel %vm351_vm2, 0.0, %v316_v10 }
 0x1b5   :  { %v484_v19 = vmul.f32 %v399_v16, %v399_v16  ;;  %v384_v23 = vsel %vm352_vm1, %v590_v15, 0.0  ;;  %vm360_vm9 = vcmp.eq.s32.totalorder %v342_v8, %v802_v6  ;;  %vm555_vm1 = vcmask 0  }
 0x1b6   :  { %502 = vadd.xlane.f32.xlu1 %v485_v13  ;;  %v383_v17 = vsel %vm351_vm2, %v589_v12, 0.0  ;;  %v416_v26 = vmul.f32 %v384_v23, %v384_v23  ;;  %v845_v12 = vadd.s32 112, %v799_v4 }
 0x1b7   :  { %v415_v18 = vmul.f32 %v383_v17, %v383_v17 }
 0x1b8   :  { %v632_v20 = vpop.f32.mrb[2].mxu0  ;;  %vm365_vm10 = vcmp.eq.s32.totalorder %v845_v12, %v802_v6 }
 0x1b9   :  { %431 = vadd.xlane.f32.xlu0 %v415_v18  ;;  %v319_v21 = vmul.f32 0.0625, %v632_v20  ;;  %v247_v22 = vpop.f32.mrb[3].mxu0  ;;  %v853_v18 = vadd.s32 120, %v799_v4 }
 0x1ba   :  { %500 = vadd.xlane.f32.xlu1 %v484_v19  ;;  %v318_v27 = vmul.f32 0.0625, %v247_v22  ;;  %v341_v19 = vadd.s32 64, %v799_v4 }
 0x1bb   :  { %v402_v25 = vsel %vm354_vm3, 0.0, %v319_v21  ;;  %v592_v30 = vadd.f32 -1.0, %v319_v21  ;;  %vm366_vm11 = vcmp.eq.s32.totalorder %v853_v18, %v802_v6 }
 0x1bc   :  { %v487_v28 = vmul.f32 %v402_v25, %v402_v25  ;;  %v401_v31 = vsel %vm353_vm4, 0.0, %v318_v27  ;;  %v591_v35 = vadd.f32 -1.0, %v318_v27  ;;  %vm359_vm12 = vcmp.eq.s32.totalorder %v341_v19, %v802_v6 }
 0x1bd   :  { %v486_v33 = vmul.f32 %v401_v31, %v401_v31  ;;  %v386_v36 = vsel %vm354_vm3, %v592_v30, 0.0 }
 0x1be   :  { %433 = vadd.xlane.f32.xlu1 %v416_v26  ;;  %v418_v38 = vmul.f32 %v386_v36, %v386_v36  ;;  %v385_v40 = vsel %vm353_vm4, %v591_v35, 0.0 }
 0x1bf   :  { %v417_v44 = vmul.f32 %v385_v40, %v385_v40  ;;  %v343_v40 = vadd.s32 80, %v799_v4 }
 0x1c0   :  { %v635_v29 = vpop.f32.mrb[4].mxu0 }
 0x1c1   :  { %v257_v32 = vpop.f32.mrb[5].mxu0  ;;  %v321_v37 = vmul.f32 0.0625, %v635_v29  ;;  %vm361_vm14 = vcmp.eq.s32.totalorder %v343_v40, %v802_v6 }
 0x1c2   :  { %506 = vadd.xlane.f32.xlu1 %v487_v28  ;;  %v320_v45 = vmul.f32 0.0625, %v257_v32 }
 0x1c3   :  { %v404_v43 = vsel %vm356_vm5, 0.0, %v321_v37  ;;  %v594_v48 = vadd.f32 -1.0, %v321_v37 }
 0x1c4   :  { %v489_v46 = vmul.f32 %v404_v43, %v404_v43  ;;  %v403_v49 = vsel %vm355_vm6, 0.0, %v320_v45  ;;  %v593_v53 = vadd.f32 -1.0, %v320_v45 }
 0x1c5   :  { %v488_v51 = vmul.f32 %v403_v49, %v403_v49  ;;  %v388_v54 = vsel %vm356_vm5, %v594_v48, 0.0  ;;  %v346_v48 = vadd.s32 104, %v799_v4 }
 0x1c6   :  { %504 = vadd.xlane.f32.xlu1 %v486_v33  ;;  %v420_v56 = vmul.f32 %v388_v54, %v388_v54  ;;  %v387_v58 = vsel %vm355_vm6, %v593_v53, 0.0  ;;  %v345_v54 = vadd.s32 96, %v799_v4 }
 0x1c7   :  { %v419_v62 = vmul.f32 %v387_v58, %v387_v58  ;;  %vm364_vm15 = vcmp.eq.s32.totalorder %v346_v48, %v802_v6 }
 0x1c8   :  { %v638_v39 = vpop.f32.mrb[6].mxu0  ;;  %vm363_vm0 = vcmp.eq.s32.totalorder %v345_v54, %v802_v6 }
 0x1c9   :  { %v267_v41 = vpop.f32.mrb[7].mxu0  ;;  %v323_v55 = vmul.f32 0.0625, %v638_v39 }
 0x1ca   :  { %437 = vadd.xlane.f32.xlu1 %v418_v38  ;;  %v322_v63 = vmul.f32 0.0625, %v267_v41 }
 0x1cb   :  { %v406_v61 = vsel %vm358_vm7, 0.0, %v323_v55  ;;  %v596_v2 = vadd.f32 -1.0, %v323_v55 }
 0x1cc   :  { %v491_v0 = vmul.f32 %v406_v61, %v406_v61  ;;  %v405_v3 = vsel %vm357_vm8, 0.0, %v322_v63  ;;  %v595_v9 = vadd.f32 -1.0, %v322_v63 }
 0x1cd   :  { %v490_v7 = vmul.f32 %v405_v3, %v405_v3  ;;  %v390_v10 = vsel %vm358_vm7, %v596_v2, 0.0 }
 0x1ce   :  { %435 = vadd.xlane.f32.xlu1 %v417_v44  ;;  %v422_v13 = vmul.f32 %v390_v10, %v390_v10  ;;  %v389_v15 = vsel %vm357_vm8, %v595_v9, 0.0 }
 0x1cf   :  { %v421_v23 = vmul.f32 %v389_v15, %v389_v15 }
 0x1d0   :  { %v641_v47 = vpop.f32.mrb[0].mxu1 }
 0x1d1   :  { %v277_v50 = vpop.f32.mrb[1].mxu1  ;;  %v325_v11 = vmul.f32 0.0625, %v641_v47 }
 0x1d2   :  { %510 = vadd.xlane.f32.xlu1 %v489_v46  ;;  %v324_v25 = vmul.f32 0.0625, %v277_v50 }
 0x1d3   :  { %v408_v21 = vsel %vm360_vm9, 0.0, %v325_v11  ;;  %v598_v30 = vadd.f32 -1.0, %v325_v11 }
 0x1d4   :  { %v493_v26 = vmul.f32 %v408_v21, %v408_v21  ;;  %v407_v31 = vsel %vm359_vm12, 0.0, %v324_v25  ;;  %v597_v35 = vadd.f32 -1.0, %v324_v25 }
 0x1d5   :  { %v492_v33 = vmul.f32 %v407_v31, %v407_v31  ;;  %v392_v36 = vsel %vm360_vm9, %v598_v30, 0.0 }
 0x1d6   :  { %508 = vadd.xlane.f32.xlu1 %v488_v51  ;;  %v424_v38 = vmul.f32 %v392_v36, %v392_v36  ;;  %v391_v39 = vsel %vm359_vm12, %v597_v35, 0.0 }
 0x1d7   :  { %v423_v42 = vmul.f32 %v391_v39, %v391_v39 }
 0x1d8   :  { %v644_v57 = vpop.f32.mrb[2].mxu1 }
 0x1d9   :  { %v829_v59 = vpop.f32.mrb[3].mxu1  ;;  %v327_v37 = vmul.f32 0.0625, %v644_v57 }
 0x1da   :  { %441 = vadd.xlane.f32.xlu1 %v420_v56  ;;  %v326_v43 = vmul.f32 0.0625, %v829_v59 }
 0x1db   :  { %v410_v41 = vsel %vm362_vm13, 0.0, %v327_v37  ;;  %v600_v45 = vadd.f32 -1.0, %v327_v37 }
 0x1dc   :  { %v495_v44 = vmul.f32 %v410_v41, %v410_v41  ;;  %v409_v46 = vsel %vm361_vm14, 0.0, %v326_v43  ;;  %v599_v49 = vadd.f32 -1.0, %v326_v43 }
 0x1dd   :  { %v494_v47 = vmul.f32 %v409_v46, %v409_v46  ;;  %v394_v50 = vsel %vm362_vm13, %v600_v45, 0.0 }
 0x1de   :  { %439 = vadd.xlane.f32.xlu1 %v419_v62  ;;  %v426_v52 = vmul.f32 %v394_v50, %v394_v50  ;;  %v393_v53 = vsel %vm361_vm14, %v599_v49, 0.0 }
 0x1df   :  { %v425_v56 = vmul.f32 %v393_v53, %v393_v53 }
 0x1e0   :  { %v835_v1 = vpop.f32.mrb[4].mxu1 }
 0x1e1   :  { %v839_v5 = vpop.f32.mrb[5].mxu1  ;;  %v329_v51 = vmul.f32 0.0625, %v835_v1 }
 0x1e2   :  { %514 = vadd.xlane.f32.xlu1 %v491_v0  ;;  %v328_v57 = vmul.f32 0.0625, %v839_v5 }
 0x1e3   :  { %v412_v55 = vsel %vm364_vm15, 0.0, %v329_v51  ;;  %v602_v59 = vadd.f32 -1.0, %v329_v51 }
 0x1e4   :  { %v497_v58 = vmul.f32 %v412_v55, %v412_v55  ;;  %v411_v60 = vsel %vm363_vm0, 0.0, %v328_v57  ;;  %v601_v62 = vadd.f32 -1.0, %v328_v57 }
 0x1e5   :  { %v496_v61 = vmul.f32 %v411_v60, %v411_v60  ;;  %v396_v63 = vsel %vm364_vm15, %v602_v59, 0.0 }
 0x1e6   :  { %512 = vadd.xlane.f32.xlu1 %v490_v7  ;;  %v428_v0 = vmul.f32 %v396_v63, %v396_v63  ;;  %v395_v1 = vsel %vm363_vm0, %v601_v62, 0.0 }
 0x1e7   :  { %v427_v2 = vmul.f32 %v395_v1, %v395_v1 }
 0x1e8   :  { %v650_v14 = vpop.f32.mrb[6].mxu1 }
 0x1e9   :  { %v850_v16 = vmul.f32 0.0625, %v650_v14  ;;  %v307_v17 = vpop.f32.mrb[7].mxu1 }
 0x1ea   :  { %445 = vadd.xlane.f32.xlu1 %v422_v13  ;;  %v856_v20 = vmul.f32 0.0625, %v307_v17 }
 0x1eb   :  { %v604_v22 = vadd.f32 -1.0, %v850_v16  ;;  %v414_v5 = vsel %vm366_vm11, 0.0, %v850_v16 }
 0x1ec   :  { %v603_v24 = vadd.f32 -1.0, %v856_v20  ;;  %v413_v4 = vsel %vm365_vm10, 0.0, %v856_v20  ;;  %v499_v7 = vmul.f32 %v414_v5, %v414_v5 }
 0x1ed   :  { %v398_v28 = vsel %vm366_vm11, %v604_v22, 0.0  ;;  %v498_v3 = vmul.f32 %v413_v4, %v413_v4 }
 0x1ee   :  { %443 = vadd.xlane.f32.xlu1 %v421_v23  ;;  %v397_v27 = vsel %vm365_vm10, %v603_v24, 0.0  ;;  %v430_v32 = vmul.f32 %v398_v28, %v398_v28 }
 0x1ef   :  { %v429_v29 = vmul.f32 %v397_v27, %v397_v27 }
 0x1f1   :  { %459 = vadd.xlane.f32.xlu0 %v429_v29 }
 0x1f2   :  { %518 = vadd.xlane.f32.xlu1 %v493_v26 }
 0x1f5   :  { %461 = vadd.xlane.f32.xlu0 %v430_v32 }
 0x1f6   :  { %516 = vadd.xlane.f32.xlu1 %v492_v33 }
 0x1fa   :  { %449 = vadd.xlane.f32.xlu1 %v424_v38 }
 0x1fe   :  { %447 = vadd.xlane.f32.xlu1 %v423_v42 }
 0x202   :  { %522 = vadd.xlane.f32.xlu1 %v495_v44 }
 0x206   :  { %520 = vadd.xlane.f32.xlu1 %v494_v47 }
 0x20a   :  { %453 = vadd.xlane.f32.xlu1 %v426_v52 }
 0x20e   :  { %451 = vadd.xlane.f32.xlu1 %v425_v56 }
 0x212   :  { %526 = vadd.xlane.f32.xlu1 %v497_v58 }
 0x216   :  { %524 = vadd.xlane.f32.xlu1 %v496_v61 }
 0x21a   :  { %457 = vadd.xlane.f32.xlu1 %v428_v0 }
 0x21e   :  { %455 = vadd.xlane.f32.xlu1 %v427_v2 }
 0x222   :  { %528 = vadd.xlane.f32.xlu1 %v498_v3 }
 0x226   :  { %530 = vadd.xlane.f32.xlu1 %v499_v7 }
 0x243   :  { %v503_v8 = vpop.xlane.xlu1 %502 }
 0x246   :  { %v432_v19 = vpop.xlane.xlu0 %431 }
 0x247   :  { %v501_v9 = vpop.xlane.xlu1 %500 }
 0x248   :  { %v532_v10 = vadd.f32 %v503_v8, %v501_v9 }
 0x24b   :  { %v434_v11 = vpop.xlane.xlu1 %433 }
 0x24c   :  { %v463_v20 = vadd.f32 %v434_v11, %v432_v19 }
 0x24f   :  { %v507_v13 = vpop.xlane.xlu1 %506 }
 0x253   :  { %v505_v14 = vpop.xlane.xlu1 %504 }
 0x254   :  { %v533_v15 = vadd.f32 %v532_v10, %v505_v14 }
 0x256   :  { %v534_v12 = vadd.f32 %v533_v15, %v507_v13 }
 0x257   :  { %v438_v17 = vpop.xlane.xlu1 %437 }
 0x25b   :  { %v436_v21 = vpop.xlane.xlu1 %435 }
 0x25c   :  { %v464_v22 = vadd.f32 %v463_v20, %v436_v21 }
 0x25e   :  { %v465_v23 = vadd.f32 %v464_v22, %v438_v17 }
 0x25f   :  { %v511_v24 = vpop.xlane.xlu1 %510 }
 0x263   :  { %v509_v6 = vpop.xlane.xlu1 %508 }
 0x264   :  { %v535_v16 = vadd.f32 %v534_v12, %v509_v6 }
 0x266   :  { %v536_v18 = vadd.f32 %v535_v16, %v511_v24 }
 0x267   :  { %v442_v25 = vpop.xlane.xlu1 %441 }
 0x26b   :  { %v440_v26 = vpop.xlane.xlu1 %439 }
 0x26c   :  { %v466_v37 = vadd.f32 %v465_v23, %v440_v26 }
 0x26e   :  { %v467_v39 = vadd.f32 %v466_v37, %v442_v25 }
 0x26f   :  { %v515_v27 = vpop.xlane.xlu1 %514 }
 0x273   :  { %v513_v28 = vpop.xlane.xlu1 %512 }
 0x274   :  { %v537_v40 = vadd.f32 %v536_v18, %v513_v28 }
 0x276   :  { %v538_v43 = vadd.f32 %v537_v40, %v515_v27 }
 0x277   :  { %v446_v29 = vpop.xlane.xlu1 %445 }
 0x27b   :  { %v444_v30 = vpop.xlane.xlu1 %443 }
 0x27c   :  { %v468_v41 = vadd.f32 %v467_v39, %v444_v30 }
 0x27e   :  { %v469_v44 = vadd.f32 %v468_v41, %v446_v29  ;;  %v460_v54 = vpop.xlane.xlu0 %459 }
 0x27f   :  { %v519_v31 = vpop.xlane.xlu1 %518 }
 0x282   :  { %v462_v62 = vpop.xlane.xlu0 %461 }
 0x283   :  { %v517_v32 = vpop.xlane.xlu1 %516 }
 0x284   :  { %v539_v46 = vadd.f32 %v538_v43, %v517_v32 }
 0x286   :  { %v540_v49 = vadd.f32 %v539_v46, %v519_v31 }
 0x287   :  { %v450_v33 = vpop.xlane.xlu1 %449 }
 0x28b   :  { %v448_v34 = vpop.xlane.xlu1 %447 }
 0x28c   :  { %v470_v47 = vadd.f32 %v469_v44, %v448_v34 }
 0x28e   :  { %v471_v50 = vadd.f32 %v470_v47, %v450_v33 }
 0x28f   :  { %v523_v35 = vpop.xlane.xlu1 %522 }
 0x293   :  { %v521_v36 = vpop.xlane.xlu1 %520 }
 0x294   :  { %v541_v51 = vadd.f32 %v540_v49, %v521_v36 }
 0x296   :  { %v542_v55 = vadd.f32 %v541_v51, %v523_v35 }
 0x297   :  { %v454_v38 = vpop.xlane.xlu1 %453 }
 0x29b   :  { %v452_v42 = vpop.xlane.xlu1 %451 }
 0x29c   :  { %v472_v52 = vadd.f32 %v471_v50, %v452_v42 }
 0x29e   :  { %v473_v56 = vadd.f32 %v472_v52, %v454_v38 }
 0x29f   :  { %v527_v45 = vpop.xlane.xlu1 %526 }
 0x2a3   :  { %v525_v48 = vpop.xlane.xlu1 %524 }
 0x2a4   :  { %v543_v58 = vadd.f32 %v542_v55, %v525_v48 }
 0x2a6   :  { %v544_v0 = vadd.f32 %v543_v58, %v527_v45 }
 0x2a7   :  { %v458_v53 = vpop.xlane.xlu1 %457 }
 0x2ab   :  { %v456_v57 = vpop.xlane.xlu1 %455 }
 0x2ac   :  { %v474_v59 = vadd.f32 %v473_v56, %v456_v57 }
 0x2ae   :  { %v475_v60 = vadd.f32 %v474_v59, %v458_v53 }
 0x2af   :  { %v529_v61 = vpop.xlane.xlu1 %528 }
 0x2b0   :  { %v476_v63 = vadd.f32 %v475_v60, %v460_v54  ;;  %v545_v1 = vadd.f32 %v544_v0, %v529_v61 }
 0x2b2   :  { %v477_v4 = vadd.f32 %v476_v63, %v462_v62 }
 0x2b3   :  { %v531_v2 = vpop.xlane.xlu1 %530 }
 0x2b4   :  { %v478_v3 = vrot.slane %v477_v4, 4  ;;  %v546_v5 = vadd.f32 %v545_v1, %v531_v2 }
 0x2b6   :  { %v479_v7 = vadd.f32 %v478_v3, %v477_v4  ;;  %v547_v8 = vrot.slane %v546_v5, 4 }
 0x2b8   :  { %v480_v9 = vrot.slane %v479_v7, 2  ;;  %v548_v10 = vadd.f32 %v547_v8, %v546_v5 }
 0x2ba   :  { %v481_v11 = vadd.f32 %v480_v9, %v479_v7  ;;  %v549_v13 = vrot.slane %v548_v10, 2 }
 0x2bc   :  { %v550_v14 = vadd.f32 %v549_v13, %v548_v10  ;;  %v482_v15 = vrot.slane %v481_v11, 1 }
 0x2be   :  { %v551_v12 = vrot.slane %v550_v14, 1  ;;  %v483_v19 = vadd.f32 %v482_v15, %v481_v11 }
 0x2c0   :  { %v552_v17 = vadd.f32 %v551_v12, %v550_v14 }
 0x2c2   :  { %v553_v20 = vmul.f32 0.005, %v552_v17 }
 0x2c4   :  { %v554_v21 = vadd.f32 %v553_v20, %v483_v19 }
 0x2c6   :  { %556 = vst.msk [vmem:[#allocation7] sm:$0x1] %vm555_vm1, %v554_v21 }
 0x2c7   :  { %722 = shalt.err (!%p719_p6)
}
 0x2c8   :  { %s723_s11 = scalar_lea.hbm %s916_s2, 16 }
 0x2c9   :  { %p724_p7 = scmp.ne.s32.totalorder %s916_s2, %s723_s11  ;;  %p727_p8 = scmp.lt.u32.totalorder %s723_s11, %s916_s2 }
 0x2cb   :  { %p729_p9 = pnand %p727_p8, %p724_p7 }
 0x2cd   :  { %732 = shalt.err (!%p729_p9)
}
 0x2ce   :  { %566 = dma.vmem_to_hbm [thread:$0]  %s564_s6, 16, %s916_s2, [#allocation4]  }
 0x2cf   :  { %737 = dma.done.wait [#allocation4], 16  }
 0x2d0   :  { %738 = vsyncadd [#allocation4], 4294967280 }
 0x2d1   :  { %570 = vsyncpa [#allocation3], 1 }
 0x2d2   :  { %571 = vsyncpa [#allocation6], 1 }
 0x2d3   :  { %572 = vsyncpa [#allocation4], 1 }

</bundles_post_ra>
